<compile_context>
chip_gen: v5e
topology: v5e:2x2
jax: 0.10.0
libtpu: 0.0.40
codegen_flags: <defaults>
</compile_context>

<pallas_src>
import functools

import jax
import jax.numpy as jnp
from jax.experimental import pallas as pl
from jax.experimental.pallas import tpu as pltpu

# Module constants (from the PyTorch script)
FEATURE_NUM = 28 * 28   # 784
HIDDEN_NUM = 256
LABEL_NUM = 10
DROP_PROB1 = 0.2
DROP_PROB2 = 0.0

N_PAD = 128             # lane-dense padded output width (>= LABEL_NUM)
MAX_TILE_M = 512        # batch-tile rows: MXU-filling M, fits default scoped VMEM everywhere


def _choose_tile_m(batch: int) -> int:
    """Smallest sublane-aligned tile covering the batch, capped at MAX_TILE_M."""
    padded = max(8, ((batch + 7) // 8) * 8)
    return padded if padded <= MAX_TILE_M else MAX_TILE_M


def _make_mlp_kernel(use_drop1: bool, use_drop2: bool,
                     drop_prob1: float, drop_prob2: float):
    inv_keep1 = (1.0 / (1.0 - drop_prob1)) if use_drop1 else 1.0
    inv_keep2 = (1.0 / (1.0 - drop_prob2)) if use_drop2 else 1.0

    def kernel(*refs):
        it = iter(refs)
        x_ref = next(it)     # (TM, 784) bf16
        w1_ref = next(it)    # (784, 256) bf16
        b1_ref = next(it)    # (1, 256)   f32
        w2_ref = next(it)    # (256, 128) bf16 (zero-padded cols 10..127)
        b2_ref = next(it)    # (1, 128)   f32  (zero-padded)
        m1_ref = next(it) if use_drop1 else None   # (TM, 256) bf16 {0,1}
        m2_ref = next(it) if use_drop2 else None   # (TM, 128) bf16 {0,1}
        o_ref = next(it)     # (TM, 128)  f32

        # ----- linear1 on the MXU: bf16 inputs, f32 accumulation -----
        h = jnp.dot(x_ref[...], w1_ref[...], preferred_element_type=jnp.float32)
        # ----- bias + ReLU (VPU) -----
        h = jnp.maximum(h + b1_ref[...], 0.0)

        # ----- dropout1 (inverted dropout; mask streamed in, scaled in f32) -----
        if use_drop1:
            h = h * (m1_ref[...].astype(jnp.float32) * inv_keep1)

        # ----- linear2 on the MXU (N padded to 128 lanes) -----
        out = jnp.dot(h.astype(jnp.bfloat16), w2_ref[...],
                      preferred_element_type=jnp.float32)
        out = out + b2_ref[...]

        # ----- dropout2 (p = 0.0 by default -> branch not compiled) -----
        if use_drop2:
            out = out * (m2_ref[...].astype(jnp.float32) * inv_keep2)

        o_ref[...] = out.astype(o_ref.dtype)

    return kernel


@functools.partial(jax.jit, static_argnames=("drop_prob1", "drop_prob2", "training"))
def mlp_forward(x, w1, b1, w2, b2, key, *,
                drop_prob1=DROP_PROB1, drop_prob2=DROP_PROB2, training=True):
    """x: (B, 784). w1: (784, 256), b1: (256,), w2: (256, 10), b2: (10,).

    Returns (B, 10) f32. `key` drives the dropout masks in training mode.
    """
    batch = x.shape[0]
    use_drop1 = bool(training and drop_prob1 > 0.0)
    use_drop2 = bool(training and drop_prob2 > 0.0)

    tm = _choose_tile_m(batch)
    b_pad = ((batch + tm - 1) // tm) * tm
    grid = (b_pad // tm,)

    # bf16 activations / weights for the MXU; biases stay f32 (added post-accumulate).
    x_bf = x.astype(jnp.bfloat16)
    if b_pad != batch:
        x_bf = jnp.pad(x_bf, ((0, b_pad - batch), (0, 0)))
    w1_bf = w1.astype(jnp.bfloat16)
    b1_f = b1.reshape(1, HIDDEN_NUM).astype(jnp.float32)
    w2_bf = jnp.pad(w2.astype(jnp.bfloat16), ((0, 0), (0, N_PAD - LABEL_NUM)))
    b2_f = jnp.pad(b2.astype(jnp.float32), (0, N_PAD - LABEL_NUM)).reshape(1, N_PAD)

    operands = [x_bf, w1_bf, b1_f, w2_bf, b2_f]
    in_specs = [
        pl.BlockSpec((tm, FEATURE_NUM), lambda i: (i, 0)),          # x: streamed per tile
        pl.BlockSpec((FEATURE_NUM, HIDDEN_NUM), lambda i: (0, 0)),  # w1: VMEM-resident
        pl.BlockSpec((1, HIDDEN_NUM), lambda i: (0, 0)),            # b1
        pl.BlockSpec((HIDDEN_NUM, N_PAD), lambda i: (0, 0)),        # w2 (padded)
        pl.BlockSpec((1, N_PAD), lambda i: (0, 0)),                 # b2 (padded)
    ]

    bytes_accessed = (x_bf.size * 2 + w1_bf.size * 2 + b1_f.size * 4
                      + w2_bf.size * 2 + b2_f.size * 4 + b_pad * N_PAD * 4)

    if use_drop1 or use_drop2:
        k1, k2 = jax.random.split(key)
    if use_drop1:
        m1 = jax.random.bernoulli(k1, 1.0 - drop_prob1,
                                  (b_pad, HIDDEN_NUM)).astype(jnp.bfloat16)
        operands.append(m1)
        in_specs.append(pl.BlockSpec((tm, HIDDEN_NUM), lambda i: (i, 0)))
        bytes_accessed += m1.size * 2
    if use_drop2:
        m2 = jax.random.bernoulli(k2, 1.0 - drop_prob2,
                                  (b_pad, N_PAD)).astype(jnp.bfloat16)
        operands.append(m2)
        in_specs.append(pl.BlockSpec((tm, N_PAD), lambda i: (i, 0)))
        bytes_accessed += m2.size * 2

    kernel = _make_mlp_kernel(use_drop1, use_drop2, drop_prob1, drop_prob2)

    out_padded = pl.pallas_call(
        kernel,
        out_shape=jax.ShapeDtypeStruct((b_pad, N_PAD), jnp.float32),
        grid=grid,
        in_specs=in_specs,
        out_specs=pl.BlockSpec((tm, N_PAD), lambda i: (i, 0)),
        compiler_params=pltpu.CompilerParams(dimension_semantics=("parallel",)),
        cost_estimate=pl.CostEstimate(
            flops=2 * b_pad * (FEATURE_NUM * HIDDEN_NUM + HIDDEN_NUM * N_PAD),
            transcendentals=0,
            bytes_accessed=int(bytes_accessed),
        ),
    )(*operands)

    return out_padded[:batch, :LABEL_NUM]


def init_params(key):
    """Deterministic init mirroring nn.Linear shapes; weights stored as (in, out)."""
    k1, k2, k3, k4 = jax.random.split(key, 4)
    lim1 = 1.0 / (FEATURE_NUM ** 0.5)
    lim2 = 1.0 / (HIDDEN_NUM ** 0.5)
    w1 = jax.random.uniform(k1, (FEATURE_NUM, HIDDEN_NUM), jnp.float32, -lim1, lim1)
    b1 = jax.random.uniform(k2, (HIDDEN_NUM,), jnp.float32, -lim1, lim1)
    w2 = jax.random.uniform(k3, (HIDDEN_NUM, LABEL_NUM), jnp.float32, -lim2, lim2)
    b2 = jax.random.uniform(k4, (LABEL_NUM,), jnp.float32, -lim2, lim2)
    return w1, b1, w2, b2


def _reference_eval_bf16(x, w1, b1, w2, b2):
    """Eval-mode (dropout=identity) reference matching the kernel's bf16 MXU inputs."""
    f = lambda a: a.astype(jnp.bfloat16).astype(jnp.float32)
    h = jnp.maximum(jnp.dot(f(x), f(w1)) + b1.astype(jnp.float32), 0.0)
    return jnp.dot(f(h), f(w2)) + b2.astype(jnp.float32)


if __name__ == "__main__":
    key = jax.random.PRNGKey(0)
    kx, kp, kd = jax.random.split(key, 3)

    batch = 8
    x = jax.random.normal(kx, (batch, FEATURE_NUM), jnp.float32)
    w1, b1, w2, b2 = init_params(kp)

    # Training-mode forward (dropout active: p1=0.2, p2=0.0), deterministic key.
    out_train = mlp_forward(x, w1, b1, w2, b2, kd,
                            drop_prob1=DROP_PROB1, drop_prob2=DROP_PROB2, training=True)
    out_train = jax.block_until_ready(out_train)
    assert out_train.shape == (batch, LABEL_NUM)
    assert bool(jnp.all(jnp.isfinite(out_train)))

    # Eval-mode forward (dropout = identity) vs. bf16-matched pure-JAX reference.
    out_eval = mlp_forward(x, w1, b1, w2, b2, kd,
                           drop_prob1=DROP_PROB1, drop_prob2=DROP_PROB2, training=False)
    out_eval = jax.block_until_ready(out_eval)
    ref = _reference_eval_bf16(x, w1, b1, w2, b2)
    assert out_eval.shape == (batch, LABEL_NUM)
    assert bool(jnp.allclose(out_eval, ref, atol=5e-2, rtol=5e-2))

    print("KERNEL_OK")
</pallas_src>

<mosaic_0001>
module attributes {stable_mosaic.version = 11 : i64} {
  func.func @kernel(%arg0: i32, %arg1: memref<8x784xbf16, #tpu.memory_space<vmem>>, %arg2: memref<784x256xbf16, #tpu.memory_space<vmem>>, %arg3: memref<1x256xf32, #tpu.memory_space<vmem>>, %arg4: memref<256x128xbf16, #tpu.memory_space<vmem>>, %arg5: memref<1x128xf32, #tpu.memory_space<vmem>>, %arg6: memref<8x256xbf16, #tpu.memory_space<vmem>>, %arg7: memref<8x128xf32, #tpu.memory_space<vmem>>) attributes {dimension_semantics = [#tpu.dimension_semantics<parallel>], iteration_bounds = array<i64: 1>, scalar_prefetch = 0 : i64, scratch_operands = 0 : i64, tpu.core_type = #tpu.core_type<tc>, window_params = [{transform_indices = @transform_0, window_bounds = array<i64: 8, 784>}, {pipeline_mode = #tpu.pipeline_mode<synchronous>, transform_indices = @transform_1, window_bounds = array<i64: 784, 256>}, {pipeline_mode = #tpu.pipeline_mode<synchronous>, transform_indices = @transform_2, window_bounds = array<i64: 1, 256>}, {pipeline_mode = #tpu.pipeline_mode<synchronous>, transform_indices = @transform_3, window_bounds = array<i64: 256, 128>}, {pipeline_mode = #tpu.pipeline_mode<synchronous>, transform_indices = @transform_4, window_bounds = array<i64: 1, 128>}, {transform_indices = @transform_5, window_bounds = array<i64: 8, 256>}, {transform_indices = @transform_6, window_bounds = array<i64: 8, 128>}]} {
    %c0 = arith.constant 0 : index
    %c0_0 = arith.constant 0 : index
    %0 = vector.load %arg1[%c0, %c0_0] : memref<8x784xbf16, #tpu.memory_space<vmem>>, vector<8x784xbf16>
    %c0_1 = arith.constant 0 : index
    %c0_2 = arith.constant 0 : index
    %1 = vector.load %arg2[%c0_1, %c0_2] : memref<784x256xbf16, #tpu.memory_space<vmem>>, vector<784x256xbf16>
    %cst = arith.constant dense<0.000000e+00> : vector<8x256xf32>
    %2 = tpu.matmul %0, %1, %cst {dimension_numbers = #tpu.dot_dimension_numbers<[1], [0], [0], [1], [0, 0, 1, 1], [], []>} : vector<8x784xbf16>, vector<784x256xbf16>, vector<8x256xf32> -> vector<8x256xf32>
    %c0_3 = arith.constant 0 : index
    %c0_4 = arith.constant 0 : index
    %3 = vector.load %arg3[%c0_3, %c0_4] : memref<1x256xf32, #tpu.memory_space<vmem>>, vector<1x256xf32>
    %4 = vector.broadcast %3 : vector<1x256xf32> to vector<8x256xf32>
    %5 = arith.addf %2, %4 : vector<8x256xf32>
    %cst_5 = arith.constant 0.000000e+00 : f32
    %6 = vector.broadcast %cst_5 : f32 to vector<8x256xf32>
    %7 = arith.maximumf %5, %6 : vector<8x256xf32>
    %c0_6 = arith.constant 0 : index
    %c0_7 = arith.constant 0 : index
    %8 = vector.load %arg6[%c0_6, %c0_7] : memref<8x256xbf16, #tpu.memory_space<vmem>>, vector<8x256xbf16>
    %9 = arith.extf %8 : vector<8x256xbf16> to vector<8x256xf32>
    %cst_8 = arith.constant 1.250000e+00 : f32
    %10 = vector.broadcast %cst_8 : f32 to vector<8x256xf32>
    %11 = arith.mulf %9, %10 : vector<8x256xf32>
    %12 = arith.mulf %7, %11 : vector<8x256xf32>
    %13 = arith.truncf %12 : vector<8x256xf32> to vector<8x256xbf16>
    %c0_9 = arith.constant 0 : index
    %c0_10 = arith.constant 0 : index
    %14 = vector.load %arg4[%c0_9, %c0_10] : memref<256x128xbf16, #tpu.memory_space<vmem>>, vector<256x128xbf16>
    %cst_11 = arith.constant dense<0.000000e+00> : vector<8x128xf32>
    %15 = tpu.matmul %13, %14, %cst_11 {dimension_numbers = #tpu.dot_dimension_numbers<[1], [0], [0], [1], [0, 0, 1, 1], [], []>} : vector<8x256xbf16>, vector<256x128xbf16>, vector<8x128xf32> -> vector<8x128xf32>
    %c0_12 = arith.constant 0 : index
    %c0_13 = arith.constant 0 : index
    %16 = vector.load %arg5[%c0_12, %c0_13] : memref<1x128xf32, #tpu.memory_space<vmem>>, vector<1x128xf32>
    %17 = vector.broadcast %16 : vector<1x128xf32> to vector<8x128xf32>
    %18 = arith.addf %15, %17 : vector<8x128xf32>
    %c0_14 = arith.constant 0 : index
    %c0_15 = arith.constant 0 : index
    %19 = vector.load %arg7[%c0_14, %c0_15] : memref<8x128xf32, #tpu.memory_space<vmem>>, vector<8x128xf32>
    tpu.vector_store %arg7[%c0_14, %c0_15], %18 {strides = array<i32>} : memref<8x128xf32, #tpu.memory_space<vmem>>, vector<8x128xf32>,
    return
  }
  func.func @transform_0(%arg0: i32) -> (i32, i32) {
    %c0_i32 = arith.constant 0 : i32
    %c0_i32_0 = arith.constant 0 : i32
    return %arg0, %c0_i32 : i32, i32
  }
  func.func @transform_1(%arg0: i32) -> (i32, i32) {
    %c0_i32 = arith.constant 0 : i32
    %c0_i32_0 = arith.constant 0 : i32
    %c0_i32_1 = arith.constant 0 : i32
    return %c0_i32, %c0_i32_0 : i32, i32
  }
  func.func @transform_2(%arg0: i32) -> (i32, i32) {
    %c0_i32 = arith.constant 0 : i32
    %c0_i32_0 = arith.constant 0 : i32
    %c0_i32_1 = arith.constant 0 : i32
    return %c0_i32, %c0_i32_0 : i32, i32
  }
  func.func @transform_3(%arg0: i32) -> (i32, i32) {
    %c0_i32 = arith.constant 0 : i32
    %c0_i32_0 = arith.constant 0 : i32
    %c0_i32_1 = arith.constant 0 : i32
    return %c0_i32, %c0_i32_0 : i32, i32
  }
  func.func @transform_4(%arg0: i32) -> (i32, i32) {
    %c0_i32 = arith.constant 0 : i32
    %c0_i32_0 = arith.constant 0 : i32
    %c0_i32_1 = arith.constant 0 : i32
    return %c0_i32, %c0_i32_0 : i32, i32
  }
  func.func @transform_5(%arg0: i32) -> (i32, i32) {
    %c0_i32 = arith.constant 0 : i32
    %c0_i32_0 = arith.constant 0 : i32
    return %arg0, %c0_i32 : i32, i32
  }
  func.func @transform_6(%arg0: i32) -> (i32, i32) {
    %c0_i32 = arith.constant 0 : i32
    %c0_i32_0 = arith.constant 0 : i32
    return %arg0, %c0_i32 : i32, i32
  }
}

</mosaic_0001>

<bundles_post_ra>
// kernel: mlp_forward.3
= control target key start
LH: loop header
LB: loop body
LE: loop exit
PB: predicated region body
PF: predicated region fallthrough
CT: control target
= control target key end

     0   :  { %vm647_vm0 = vcmask 130048   ;;  %s2345_s0 = inlined_call_operand.vmem [shape: bf16[8,784], index: 0, kind: input, shape index: {}]   ;;  %s2346_s1 = inlined_call_operand.vmem [shape: bf16[784,256], index: 1, kind: input, shape index: {}]   ;;  %s2347_s2 = inlined_call_operand.vmem [shape: f32[1,256], index: 2, kind: input, shape index: {}]   ;;  %s2348_s3 = inlined_call_operand.vmem [shape: bf16[256,128], index: 3, kind: input, shape index: {}]   ;;  %s2349_s4 = inlined_call_operand.vmem [shape: f32[1,128], index: 4, kind: input, shape index: {}]   ;;  %s2350_s5 = inlined_call_operand.vmem [shape: bf16[8,256], index: 5, kind: input, shape index: {}]   ;;  %s2351_s6 = inlined_call_operand.hbm [shape: f32[8,128], index: 6, kind: output, shape index: {}]  }
   0x1   :  { %v1077_v0 = vld [vmem:[%s2346_s1 + $0x70] sm:$0xf]  ;;  %v1492_v1 = vld [vmem:[%s2346_s1 + $0x74] sm:$0xf0]  ;;  %v1069_v11 = vld [vmem:[%s2346_s1 + $0x60] sm:$0xf] }
   0x2   :  { %v1205_v2 = vld [vmem:[%s2346_s1 + $0x170] sm:$0xf]  ;;  %v1078_v3 = vor.u32 %v1492_v1, %v1077_v0  ;;  %v1524_v4 = vld [vmem:[%s2346_s1 + $0x174] sm:$0xf0]  ;;  %v1490_v13 = vld [vmem:[%s2346_s1 + $0x64] sm:$0xf0] }
   0x3   :  { %v1269_v5 = vld [vmem:[%s2346_s1 + $0x1f0] sm:$0xf]  ;;  %v1540_v6 = vld [vmem:[%s2346_s1 + $0x1f4] sm:$0xf0]  ;;  %v1206_v7 = vor.u32 %v1524_v4, %v1205_v2  ;;  %v1197_v14 = vld [vmem:[%s2346_s1 + $0x160] sm:$0xf]  ;;  %v1070_v16 = vor.u32 %v1490_v13, %v1069_v11 }
   0x4   :  { %v1270_v8 = vor.u32 %v1540_v6, %v1269_v5  ;;  %v1141_v9 = vld [vmem:[%s2346_s1 + $0xf0] sm:$0xf]  ;;  %v1508_v10 = vld [vmem:[%s2346_s1 + $0xf4] sm:$0xf0]  ;;  %651 = vmatpush.bf16.msra.mxu0 %v1078_v3  ;;  %v1522_v15 = vld [vmem:[%s2346_s1 + $0x164] sm:$0xf0] }
   0x5   :  { %v1142_v12 = vor.u32 %v1508_v10, %v1141_v9  ;;  %677 = vmatpush.bf16.msra.mxu2 %v1206_v7  ;;  %v1198_v17 = vor.u32 %v1522_v15, %v1197_v14  ;;  %v1261_v18 = vld [vmem:[%s2346_s1 + $0x1e0] sm:$0xf]  ;;  %v1538_v19 = vld [vmem:[%s2346_s1 + $0x1e4] sm:$0xf0]  ;;  %v1061_v23 = vld [vmem:[%s2346_s1 + $0x50] sm:$0xf] }
   0x6   :  { %690 = vmatpush.bf16.msra.mxu3 %v1270_v8  ;;  %v1133_v20 = vld [vmem:[%s2346_s1 + $0xe0] sm:$0xf]  ;;  %v1262_v21 = vor.u32 %v1538_v19, %v1261_v18  ;;  %v1506_v22 = vld [vmem:[%s2346_s1 + $0xe4] sm:$0xf0]  ;;  %v1488_v24 = vld [vmem:[%s2346_s1 + $0x54] sm:$0xf0] }
   0x7   :  { %664 = vmatpush.bf16.msra.mxu1 %v1142_v12  ;;  %v1134_v25 = vor.u32 %v1506_v22, %v1133_v20  ;;  %v1189_v26 = vld [vmem:[%s2346_s1 + $0x150] sm:$0xf]  ;;  %v1520_v27 = vld [vmem:[%s2346_s1 + $0x154] sm:$0xf0]  ;;  %v1062_v29 = vor.u32 %v1488_v24, %v1061_v23  ;;  %v1053_v35 = vld [vmem:[%s2346_s1 + $0x40] sm:$0xf] }
   0x8   :  { %v1253_v28 = vld [vmem:[%s2346_s1 + $0x1d0] sm:$0xf]  ;;  %652 = vmatpush.bf16.msra.mxu0 %v1070_v16  ;;  %v1536_v30 = vld [vmem:[%s2346_s1 + $0x1d4] sm:$0xf0]  ;;  %v1190_v33 = vor.u32 %v1520_v27, %v1189_v26  ;;  %v1486_v36 = vld [vmem:[%s2346_s1 + $0x44] sm:$0xf0] }
   0x9   :  { %v1125_v31 = vld [vmem:[%s2346_s1 + $0xd0] sm:$0xf]  ;;  %v1504_v32 = vld [vmem:[%s2346_s1 + $0xd4] sm:$0xf0]  ;;  %678 = vmatpush.bf16.msra.mxu2 %v1198_v17  ;;  %v1254_v34 = vor.u32 %v1536_v30, %v1253_v28  ;;  %v1181_v37 = vld [vmem:[%s2346_s1 + $0x140] sm:$0xf]  ;;  %v1054_v44 = vor.u32 %v1486_v36, %v1053_v35 }
   0xa   :  { %691 = vmatpush.bf16.msra.mxu3 %v1262_v21  ;;  %v1126_v38 = vor.u32 %v1504_v32, %v1125_v31  ;;  %v1518_v39 = vld [vmem:[%s2346_s1 + $0x144] sm:$0xf0]  ;;  %v1245_v40 = vld [vmem:[%s2346_s1 + $0x1c0] sm:$0xf]  ;;  %v1045_v47 = vld [vmem:[%s2346_s1 + $0x30] sm:$0xf] }
   0xb   :  { %665 = vmatpush.bf16.msra.mxu1 %v1134_v25  ;;  %v1534_v41 = vld [vmem:[%s2346_s1 + $0x1c4] sm:$0xf0]  ;;  %v1117_v42 = vld [vmem:[%s2346_s1 + $0xc0] sm:$0xf]  ;;  %v1182_v45 = vor.u32 %v1518_v39, %v1181_v37  ;;  %v1484_v48 = vld [vmem:[%s2346_s1 + $0x34] sm:$0xf0] }
   0xc   :  { %v1502_v43 = vld [vmem:[%s2346_s1 + $0xc4] sm:$0xf0]  ;;  %653 = vmatpush.bf16.msra.mxu0 %v1062_v29  ;;  %v1246_v46 = vor.u32 %v1534_v41, %v1245_v40  ;;  %v1173_v49 = vld [vmem:[%s2346_s1 + $0x130] sm:$0xf]  ;;  %v1516_v51 = vld [vmem:[%s2346_s1 + $0x134] sm:$0xf0]  ;;  %v1046_v56 = vor.u32 %v1484_v48, %v1045_v47 }
   0xd   :  { %679 = vmatpush.bf16.msra.mxu2 %v1190_v33  ;;  %v1118_v50 = vor.u32 %v1502_v43, %v1117_v42  ;;  %v1237_v52 = vld [vmem:[%s2346_s1 + $0x1b0] sm:$0xf]  ;;  %v1532_v53 = vld [vmem:[%s2346_s1 + $0x1b4] sm:$0xf0]  ;;  %v1174_v57 = vor.u32 %v1516_v51, %v1173_v49  ;;  %v1037_v59 = vld [vmem:[%s2346_s1 + $0x20] sm:$0xf] }
   0xe   :  { %692 = vmatpush.bf16.msra.mxu3 %v1254_v34  ;;  %v1109_v54 = vld [vmem:[%s2346_s1 + $0xb0] sm:$0xf]  ;;  %v1500_v55 = vld [vmem:[%s2346_s1 + $0xb4] sm:$0xf0]  ;;  %v1238_v58 = vor.u32 %v1532_v53, %v1237_v52  ;;  %v1482_v60 = vld [vmem:[%s2346_s1 + $0x24] sm:$0xf0] }
   0xf   :  { %666 = vmatpush.bf16.msra.mxu1 %v1126_v38  ;;  %v1165_v61 = vld [vmem:[%s2346_s1 + $0x120] sm:$0xf]  ;;  %v1110_v62 = vor.u32 %v1500_v55, %v1109_v54  ;;  %v1514_v63 = vld [vmem:[%s2346_s1 + $0x124] sm:$0xf0]  ;;  %v1038_v4 = vor.u32 %v1482_v60, %v1037_v59  ;;  %v1029_v7 = vld [vmem:[%s2346_s1 + $0x10] sm:$0xf] }
  0x10   :  { %654 = vmatpush.bf16.msra.mxu0 %v1054_v44  ;;  %v1229_v0 = vld [vmem:[%s2346_s1 + $0x1a0] sm:$0xf]  ;;  %v1530_v1 = vld [vmem:[%s2346_s1 + $0x1a4] sm:$0xf0]  ;;  %v1166_v5 = vor.u32 %v1514_v63, %v1165_v61  ;;  %v1480_v8 = vld [vmem:[%s2346_s1 + $0x14] sm:$0xf0] }
  0x11   :  { %680 = vmatpush.bf16.msra.mxu2 %v1182_v45  ;;  %v1101_v2 = vld [vmem:[%s2346_s1 + $0xa0] sm:$0xf]  ;;  %v1498_v3 = vld [vmem:[%s2346_s1 + $0xa4] sm:$0xf0]  ;;  %v1230_v6 = vor.u32 %v1530_v1, %v1229_v0  ;;  %v1157_v9 = vld [vmem:[%s2346_s1 + $0x110] sm:$0xf]  ;;  %v1030_v17 = vor.u32 %v1480_v8, %v1029_v7 }
  0x12   :  { %693 = vmatpush.bf16.msra.mxu3 %v1246_v46  ;;  %v1102_v10 = vor.u32 %v1498_v3, %v1101_v2  ;;  %v1512_v11 = vld [vmem:[%s2346_s1 + $0x114] sm:$0xf0]  ;;  %v1221_v12 = vld [vmem:[%s2346_s1 + $0x190] sm:$0xf]  ;;  %v1021_v16 = vld [vmem:[%s2346_s1] sm:$0xf] }
  0x13   :  { %667 = vmatpush.bf16.msra.mxu1 %v1118_v50  ;;  %v1528_v13 = vld [vmem:[%s2346_s1 + $0x194] sm:$0xf0]  ;;  %v1093_v14 = vld [vmem:[%s2346_s1 + $0x90] sm:$0xf]  ;;  %v1478_v18 = vld [vmem:[%s2346_s1 + $0x4] sm:$0xf0]  ;;  %v1158_v21 = vor.u32 %v1512_v11, %v1157_v9 }
  0x14   :  { %655 = vmatpush.bf16.msra.mxu0 %v1046_v56  ;;  %v1496_v15 = vld [vmem:[%s2346_s1 + $0x94] sm:$0xf0]  ;;  %v1149_v19 = vld [vmem:[%s2346_s1 + $0x100] sm:$0xf]  ;;  %v1510_v20 = vld [vmem:[%s2346_s1 + $0x104] sm:$0xf0]  ;;  %v1222_v22 = vor.u32 %v1528_v13, %v1221_v12  ;;  %v1022_v33 = vor.u32 %v1478_v18, %v1021_v16 }
  0x15   :  { %681 = vmatpush.bf16.msra.mxu2 %v1174_v57  ;;  %v1213_v23 = vld [vmem:[%s2346_s1 + $0x180] sm:$0xf]  ;;  %v1526_v24 = vld [vmem:[%s2346_s1 + $0x184] sm:$0xf0]  ;;  %v1094_v26 = vor.u32 %v1496_v15, %v1093_v14  ;;  %v1333_v27 = vld [vmem:[%s2346_s1 + $0x270] sm:$0xf]  ;;  %v1150_v37 = vor.u32 %v1510_v20, %v1149_v19 }
  0x16   :  { %694 = vmatpush.bf16.msra.mxu3 %v1238_v58  ;;  %v26_v25 = vld [vmem:[%s2345_s0 + $0x8] sm:$0xff]  ;;  %v1556_v28 = vld [vmem:[%s2346_s1 + $0x274] sm:$0xf0]  ;;  %v1491_v29 = vld [vmem:[%s2346_s1 + $0x74] sm:$0xf]  ;;  %v1214_v38 = vor.u32 %v1526_v24, %v1213_v23 }
  0x17   :  { %668 = vmatpush.bf16.msra.mxu1 %v1110_v62  ;;  %v1079_v30 = vld [vmem:[%s2346_s1 + $0x78] sm:$0xf0]  ;;  %v1085_v31 = vld [vmem:[%s2346_s1 + $0x80] sm:$0xf]  ;;  %v1494_v32 = vld [vmem:[%s2346_s1 + $0x84] sm:$0xf0]  ;;  %v139_v34 = vunpack.c.l.b16 %v26_v25  ;;  %v1334_v42 = vor.u32 %v1556_v28, %v1333_v27  ;;  %v140_v53 = vunpack.c.h.b16 %v26_v25 }
  0x18   :  { %656 = vmatpush.bf16.msra.mxu0 %v1038_v4  ;;  %v1405_v35 = vld [vmem:[%s2346_s1 + $0x300] sm:$0xf]  ;;  %v1574_v36 = vld [vmem:[%s2346_s1 + $0x304] sm:$0xf0]  ;;  %v1397_v39 = vld [vmem:[%s2346_s1 + $0x2f0] sm:$0xf]  ;;  %v1082_v43 = vor.u32 %v1491_v29, %v1079_v30  ;;  %v1086_v44 = vor.u32 %v1494_v32, %v1085_v31 }
  0x19   :  { %682 = vmatpush.bf16.msra.mxu2 %v1166_v5  ;;  %v1572_v40 = vld [vmem:[%s2346_s1 + $0x2f4] sm:$0xf0]  ;;  %v1507_v41 = vld [vmem:[%s2346_s1 + $0xf4] sm:$0xf]  ;;  %v1143_v45 = vld [vmem:[%s2346_s1 + $0xf8] sm:$0xf0]  ;;  %v1406_v48 = vor.u32 %v1574_v36, %v1405_v35  ;;  %v1895_v55 = vpack.c.b16 %v139_v34, %v139_v34  ;;  %v1923_v5 = vpack.c.b16 %v140_v53, %v140_v53 }
  0x1a   :  { %695 = vmatpush.bf16.msra.mxu3 %v1230_v6  ;;  %v1325_v46 = vld [vmem:[%s2346_s1 + $0x260] sm:$0xf]  ;;  %v1554_v49 = vld [vmem:[%s2346_s1 + $0x264] sm:$0xf0]  ;;  %v1489_v50 = vld [vmem:[%s2346_s1 + $0x64] sm:$0xf]  ;;  %v1398_v56 = vor.u32 %v1572_v40, %v1397_v39  ;;  %v1146_v57 = vor.u32 %v1507_v41, %v1143_v45 }
  0x1b   :  { %669 = vmatpush.bf16.msra.mxu1 %v1102_v10  ;;  %v25_v47 = vld [vmem:[%s2345_s0] sm:$0xff]  ;;  %v1071_v51 = vld [vmem:[%s2346_s1 + $0x68] sm:$0xf0]  ;;  %v1570_v59 = vld [vmem:[%s2346_s1 + $0x2e4] sm:$0xf0]  ;;  %v1326_v61 = vor.u32 %v1554_v49, %v1325_v46 }
  0x1c   :  { %657 = vmatpush.bf16.msra.mxu0 %v1030_v17  ;;  %v137_v52 = vunpack.c.l.b16 %v25_v47  ;;  %v138_v54 = vunpack.c.h.b16 %v25_v47  ;;  %v1389_v58 = vld [vmem:[%s2346_s1 + $0x2e0] sm:$0xf]  ;;  %v1074_v62 = vor.u32 %v1489_v50, %v1071_v51  ;;  %v1505_v63 = vld [vmem:[%s2346_s1 + $0xe4] sm:$0xf]  ;;  %v1135_v0 = vld [vmem:[%s2346_s1 + $0xe8] sm:$0xf0] }
  0x1d   :  { %683 = vmatpush.bf16.msra.mxu2 %v1158_v21  ;;  %v1317_v1 = vld [vmem:[%s2346_s1 + $0x250] sm:$0xf]  ;;  %v1552_v2 = vld [vmem:[%s2346_s1 + $0x254] sm:$0xf0]  ;;  %v1487_v3 = vld [vmem:[%s2346_s1 + $0x54] sm:$0xf]  ;;  %v1390_v7 = vor.u32 %v1570_v59, %v1389_v58  ;;  %v1138_v8 = vor.u32 %v1505_v63, %v1135_v0 }
  0x1e   :  { %696 = vmatpush.bf16.msra.mxu3 %v1222_v22  ;;  %v1903_v60 = vpack.c.b16 %v137_v52, %v137_v52  ;;  %v1063_v4 = vld [vmem:[%s2346_s1 + $0x58] sm:$0xf0]  ;;  %v1925_v6 = vpack.c.b16 %v138_v54, %v138_v54  ;;  %v1381_v9 = vld [vmem:[%s2346_s1 + $0x2d0] sm:$0xf]  ;;  %v1568_v10 = vld [vmem:[%s2346_s1 + $0x2d4] sm:$0xf0]  ;;  %v1318_v11 = vor.u32 %v1552_v2, %v1317_v1 }
  0x1f   :  { %670 = vmatpush.bf16.msra.mxu1 %v1094_v26  ;;  %v1066_v12 = vor.u32 %v1487_v3, %v1063_v4  ;;  %v1503_v13 = vld [vmem:[%s2346_s1 + $0xd4] sm:$0xf]  ;;  %v1127_v14 = vld [vmem:[%s2346_s1 + $0xd8] sm:$0xf0]  ;;  %v1309_v15 = vld [vmem:[%s2346_s1 + $0x240] sm:$0xf]  ;;  %v1382_v19 = vor.u32 %v1568_v10, %v1381_v9 }
  0x20   :  { %658 = vmatpush.bf16.msra.mxu0 %v1022_v33  ;;  %v1550_v16 = vld [vmem:[%s2346_s1 + $0x244] sm:$0xf0]  ;;  %v1485_v17 = vld [vmem:[%s2346_s1 + $0x44] sm:$0xf]  ;;  %v1055_v18 = vld [vmem:[%s2346_s1 + $0x48] sm:$0xf0]  ;;  %v1130_v20 = vor.u32 %v1503_v13, %v1127_v14 }
  0x21   :  { %684 = vmatpush.bf16.msra.mxu2 %v1150_v37  ;;  %v1373_v21 = vld [vmem:[%s2346_s1 + $0x2c0] sm:$0xf]  ;;  %v1566_v22 = vld [vmem:[%s2346_s1 + $0x2c4] sm:$0xf0]  ;;  %v1501_v23 = vld [vmem:[%s2346_s1 + $0xc4] sm:$0xf]  ;;  %v1310_v24 = vor.u32 %v1550_v16, %v1309_v15  ;;  %v1058_v25 = vor.u32 %v1485_v17, %v1055_v18 }
  0x22   :  { %697 = vmatpush.bf16.msra.mxu3 %v1214_v38  ;;  %v1119_v26 = vld [vmem:[%s2346_s1 + $0xc8] sm:$0xf0]  ;;  %v1301_v27 = vld [vmem:[%s2346_s1 + $0x230] sm:$0xf]  ;;  %v1548_v28 = vld [vmem:[%s2346_s1 + $0x234] sm:$0xf0]  ;;  %v1374_v32 = vor.u32 %v1566_v22, %v1373_v21 }
  0x23   :  { %671 = vmatpush.bf16.msra.mxu1 %v1086_v44  ;;  %659 = vmatmul.bf16.vlgmr.msra.gmra.mxu0 %v1903_v60  ;;  %v1483_v29 = vld [vmem:[%s2346_s1 + $0x34] sm:$0xf]  ;;  %v1047_v30 = vld [vmem:[%s2346_s1 + $0x38] sm:$0xf0]  ;;  %v28_v31 = vld [vmem:[%s2345_s0 + $0x18] sm:$0xf]  ;;  %v1122_v34 = vor.u32 %v1501_v23, %v1119_v26  ;;  %v1302_v37 = vor.u32 %v1548_v28, %v1301_v27 }
  0x24   :  { %703 = vmatpush.bf16.msrb.mxu0 %v1334_v42  ;;  %685 = vmatmul.bf16.vlgmr.msra.gmra.mxu2 %v1895_v55  ;;  %v143_v33 = vunpack.c.l.b16 %v28_v31  ;;  %v1365_v35 = vld [vmem:[%s2346_s1 + $0x2b0] sm:$0xf]  ;;  %v1564_v36 = vld [vmem:[%s2346_s1 + $0x2b4] sm:$0xf0]  ;;  %v1050_v38 = vor.u32 %v1483_v29, %v1047_v30  ;;  %v1499_v39 = vld [vmem:[%s2346_s1 + $0xb4] sm:$0xf] }
  0x25   :  { %736 = vmatpush.bf16.msrb.mxu2 %v1406_v48  ;;  %698 = vmatmul.bf16.vlgmr.msra.gmra.mxu3 %v1923_v5  ;;  %v1111_v40 = vld [vmem:[%s2346_s1 + $0xb8] sm:$0xf0]  ;;  %v1293_v41 = vld [vmem:[%s2346_s1 + $0x220] sm:$0xf]  ;;  %v1546_v42 = vld [vmem:[%s2346_s1 + $0x224] sm:$0xf0]  ;;  %v1366_v45 = vor.u32 %v1564_v36, %v1365_v35 }
  0x26   :  { %742 = vmatpush.bf16.msrb.mxu3 %v1082_v43  ;;  %672 = vmatmul.bf16.vlgmr.msra.gmra.mxu1 %v1925_v6  ;;  %v1481_v43 = vld [vmem:[%s2346_s1 + $0x24] sm:$0xf]  ;;  %v1039_v44 = vld [vmem:[%s2346_s1 + $0x28] sm:$0xf0]  ;;  %v2006_v46 = vpack.c.b16 %v143_v33, %v143_v33  ;;  %v1114_v47 = vor.u32 %v1499_v39, %v1111_v40  ;;  %v1357_v48 = vld [vmem:[%s2346_s1 + $0x2a0] sm:$0xf]  ;;  %v1294_v50 = vor.u32 %v1546_v42, %v1293_v41 }
  0x27   :  { %716 = vmatpush.bf16.msrb.mxu1 %v1398_v56  ;;  %v1562_v49 = vld [vmem:[%s2346_s1 + $0x2a4] sm:$0xf0]  ;;  %v1042_v51 = vor.u32 %v1481_v43, %v1039_v44  ;;  %v1497_v52 = vld [vmem:[%s2346_s1 + $0xa4] sm:$0xf]  ;;  %v1103_v53 = vld [vmem:[%s2346_s1 + $0xa8] sm:$0xf0] }
  0x28   :  { %704 = vmatpush.bf16.msrb.mxu0 %v1326_v61  ;;  %v1285_v54 = vld [vmem:[%s2346_s1 + $0x210] sm:$0xf]  ;;  %v1544_v56 = vld [vmem:[%s2346_s1 + $0x214] sm:$0xf0]  ;;  %v1031_v58 = vld [vmem:[%s2346_s1 + $0x18] sm:$0xf0]  ;;  %v1358_v59 = vor.u32 %v1562_v49, %v1357_v48 }
  0x29   :  { %755 = vmatpush.bf16.msra.mxu2 %v1146_v57  ;;  %v1479_v57 = vld [vmem:[%s2346_s1 + $0x14] sm:$0xf]  ;;  %v1349_v61 = vld [vmem:[%s2346_s1 + $0x290] sm:$0xf]  ;;  %v1560_v63 = vld [vmem:[%s2346_s1 + $0x294] sm:$0xf0]  ;;  %v1286_v2 = vor.u32 %v1544_v56, %v1285_v54 }
  0x2a   :  { %743 = vmatpush.bf16.msrb.mxu3 %v1074_v62  ;;  %v1106_v62 = vor.u32 %v1497_v52, %v1103_v53  ;;  %v1495_v0 = vld [vmem:[%s2346_s1 + $0x94] sm:$0xf]  ;;  %v1095_v1 = vld [vmem:[%s2346_s1 + $0x98] sm:$0xf0]  ;;  %v1034_v3 = vor.u32 %v1479_v57, %v1031_v58  ;;  %v1277_v4 = vld [vmem:[%s2346_s1 + $0x200] sm:$0xf] }
  0x2b   :  { %717 = vmatpush.bf16.msrb.mxu1 %v1390_v7  ;;  %v1542_v7 = vld [vmem:[%s2346_s1 + $0x204] sm:$0xf0]  ;;  %v1477_v9 = vld [vmem:[%s2346_s1 + $0x4] sm:$0xf]  ;;  %v1023_v10 = vld [vmem:[%s2346_s1 + $0x8] sm:$0xf0]  ;;  %v1098_v16 = vor.u32 %v1495_v0, %v1095_v1 }
  0x2c   :  { %705 = vmatpush.bf16.msrb.mxu0 %v1318_v11  ;;  %v1523_v11 = vld [vmem:[%s2346_s1 + $0x174] sm:$0xf]  ;;  %v1207_v13 = vld [vmem:[%s2346_s1 + $0x178] sm:$0xf0]  ;;  %v1341_v17 = vld [vmem:[%s2346_s1 + $0x280] sm:$0xf]  ;;  %v1026_v21 = vor.u32 %v1477_v9, %v1023_v10 }
  0x2d   :  { %756 = vmatpush.bf16.msra.mxu2 %v1138_v8  ;;  %v27_v8 = vld [vmem:[%s2345_s0 + $0x10] sm:$0xff]  ;;  %v1335_v15 = vld [vmem:[%s2346_s1 + $0x278] sm:$0xf0]  ;;  %v1558_v18 = vld [vmem:[%s2346_s1 + $0x284] sm:$0xf0] }
  0x2e   :  { %744 = vmatpush.bf16.msrb.mxu3 %v1066_v12  ;;  %v1350_v12 = vor.u32 %v1560_v63, %v1349_v61  ;;  %v1555_v14 = vld [vmem:[%s2346_s1 + $0x274] sm:$0xf]  ;;  %v1493_v22 = vld [vmem:[%s2346_s1 + $0x84] sm:$0xf]  ;;  %v1087_v23 = vld [vmem:[%s2346_s1 + $0x88] sm:$0xf0]  ;;  %v142_v30 = vunpack.c.h.b16 %v27_v8  ;;  %v1342_v31 = vor.u32 %v1558_v18, %v1341_v17 }
  0x2f   :  { %718 = vmatpush.bf16.msrb.mxu1 %v1382_v19  ;;  %v141_v19 = vunpack.c.l.b16 %v27_v8  ;;  %v1338_v26 = vor.u32 %v1555_v14, %v1335_v15  ;;  %v1271_v27 = vld [vmem:[%s2346_s1 + $0x1f8] sm:$0xf0]  ;;  %v1571_v28 = vld [vmem:[%s2346_s1 + $0x2f4] sm:$0xf]  ;;  %v1199_v33 = vld [vmem:[%s2346_s1 + $0x168] sm:$0xf0]  ;;  %v1090_v35 = vor.u32 %v1493_v22, %v1087_v23 }
  0x30   :  { %706 = vmatpush.bf16.msrb.mxu0 %v1310_v24  ;;  %v1539_v24 = vld [vmem:[%s2346_s1 + $0x1f4] sm:$0xf]  ;;  %v1399_v29 = vld [vmem:[%s2346_s1 + $0x2f8] sm:$0xf0]  ;;  %v1553_v36 = vld [vmem:[%s2346_s1 + $0x264] sm:$0xf]  ;;  %v2114_v41 = vpack.c.b16 %v142_v30, %v142_v30 }
  0x31   :  { %757 = vmatpush.bf16.msra.mxu2 %v1130_v20  ;;  %v1278_v20 = vor.u32 %v1542_v7, %v1277_v4  ;;  %v1402_v39 = vor.u32 %v1571_v28, %v1399_v29  ;;  %v1537_v40 = vld [vmem:[%s2346_s1 + $0x1e4] sm:$0xf]  ;;  %v1263_v43 = vld [vmem:[%s2346_s1 + $0x1e8] sm:$0xf0]  ;;  %v1519_v48 = vld [vmem:[%s2346_s1 + $0x154] sm:$0xf] }
  0x32   :  { %745 = vmatpush.bf16.msrb.mxu3 %v1058_v25  ;;  %v1210_v25 = vor.u32 %v1523_v11, %v1207_v13  ;;  %v1569_v44 = vld [vmem:[%s2346_s1 + $0x2e4] sm:$0xf]  ;;  %v1191_v49 = vld [vmem:[%s2346_s1 + $0x158] sm:$0xf0]  ;;  %v1266_v52 = vor.u32 %v1537_v40, %v1263_v43  ;;  %v1535_v54 = vld [vmem:[%s2346_s1 + $0x1d4] sm:$0xf] }
  0x33   :  { %719 = vmatpush.bf16.msrb.mxu1 %v1374_v32  ;;  %v1521_v32 = vld [vmem:[%s2346_s1 + $0x164] sm:$0xf]  ;;  %v1255_v56 = vld [vmem:[%s2346_s1 + $0x1d8] sm:$0xf0]  ;;  %v1194_v57 = vor.u32 %v1519_v48, %v1191_v49  ;;  %v1567_v58 = vld [vmem:[%s2346_s1 + $0x2d4] sm:$0xf] }
  0x34   :  { %707 = vmatpush.bf16.msrb.mxu0 %v1302_v37  ;;  %1411 = vmatmul.msk.bf16.vlgmr.msrb.gmra.mxu2 %vm647_vm0, %v2006_v46  ;;  %v1327_v37 = vld [vmem:[%s2346_s1 + $0x268] sm:$0xf0]  ;;  %v1202_v42 = vor.u32 %v1521_v32, %v1199_v33 }
  0x35   :  { %758 = vmatpush.bf16.msra.mxu2 %v1122_v34  ;;  %v2103_v34 = vpack.c.b16 %v141_v19, %v141_v19  ;;  %v1183_v63 = vld [vmem:[%s2346_s1 + $0x148] sm:$0xf0] }
  0x36   :  { %746 = vmatpush.bf16.msrb.mxu3 %v1050_v38  ;;  %v1274_v38 = vor.u32 %v1539_v24, %v1271_v27 }
  0x37   :  { %720 = vmatpush.bf16.msrb.mxu1 %v1366_v45  ;;  %v1391_v45 = vld [vmem:[%s2346_s1 + $0x2e8] sm:$0xf0] }
  0x38   :  { %708 = vmatpush.bf16.msrb.mxu0 %v1294_v50  ;;  %v1551_v50 = vld [vmem:[%s2346_s1 + $0x254] sm:$0xf]  ;;  %v1394_v53 = vor.u32 %v1569_v44, %v1391_v45 }
  0x39   :  { %759 = vmatpush.bf16.msra.mxu2 %v1114_v47  ;;  %v1330_v47 = vor.u32 %v1553_v36, %v1327_v37 }
  0x3a   :  { %747 = vmatpush.bf16.msrb.mxu3 %v1042_v51  ;;  %v1319_v51 = vld [vmem:[%s2346_s1 + $0x258] sm:$0xf0] }
  0x3b   :  { %721 = vmatpush.bf16.msrb.mxu1 %v1358_v59  ;;  %v1383_v59 = vld [vmem:[%s2346_s1 + $0x2d8] sm:$0xf0]  ;;  %v1322_v61 = vor.u32 %v1551_v50, %v1319_v51 }
  0x3c   :  { %709 = vmatpush.bf16.msrb.mxu0 %v1286_v2 }
  0x3d   :  { %760 = vmatpush.bf16.msra.mxu2 %v1106_v62  ;;  %v1517_v62 = vld [vmem:[%s2346_s1 + $0x144] sm:$0xf] }
  0x3e   :  { %748 = vmatpush.bf16.msrb.mxu3 %v1034_v3 }
  0x3f   :  { %722 = vmatpush.bf16.msrb.mxu1 %v1350_v12 }
  0x40   :  { %710 = vmatpush.bf16.msrb.mxu0 %v1278_v20 }
  0x41   :  { %761 = vmatpush.bf16.msra.mxu2 %v1098_v16 }
  0x42   :  { %749 = vmatpush.bf16.msrb.mxu3 %v1026_v21 }
  0x43   :  { %723 = vmatpush.bf16.msrb.mxu1 %v1342_v31  ;;  %711 = vmatmul.bf16.vlgmr.msrb.gmra.mxu0 %v2103_v34 }
  0x44   :  { %768 = vmatpush.bf16.msra.mxu0 %v1210_v25 }
  0x45   :  { %762 = vmatpush.bf16.msra.mxu2 %v1090_v35 }
  0x46   :  { %794 = vmatpush.bf16.msra.mxu3 %v1338_v26  ;;  %724 = vmatmul.bf16.vlgmr.msrb.gmra.mxu1 %v2114_v41 }
  0x47   :  { %781 = vmatpush.bf16.msra.mxu1 %v1274_v38 }
  0x48   :  { %769 = vmatpush.bf16.msra.mxu0 %v1202_v42  ;;  %763 = vmatmul.bf16.vlgmr.msra.gmra.mxu2 %v1925_v6 }
  0x49   :  { %807 = vmatpush.bf16.msrb.mxu2 %v1402_v39 }
  0x4a   :  { %795 = vmatpush.bf16.msra.mxu3 %v1330_v47 }
  0x4b   :  { %11 = vsyncpa [#allocation3], 0  ;;  %v1549_v0 = vld [vmem:[%s2346_s1 + $0x244] sm:$0xf]  ;;  %v1311_v1 = vld [vmem:[%s2346_s1 + $0x248] sm:$0xf0]  ;;  %750 = vmatmul.bf16.vlgmr.msrb.gmra.mxu3 %v1903_v60  ;;  %782 = vmatpush.bf16.msra.mxu1 %v1266_v52  ;;  %v1258_v2 = vor.u32 %v1535_v54, %v1255_v56  ;;  %v1386_v3 = vor.u32 %v1567_v58, %v1383_v59  ;;  %v1186_v6 = vor.u32 %v1517_v62, %v1183_v63 }
  0x4c   :  { %v1533_v4 = vld [vmem:[%s2346_s1 + $0x1c4] sm:$0xf]  ;;  %770 = vmatpush.bf16.msra.mxu0 %v1194_v57  ;;  %v1247_v7 = vld [vmem:[%s2346_s1 + $0x1c8] sm:$0xf0]  ;;  %v1314_v9 = vor.u32 %v1549_v0, %v1311_v1  ;;  %v1515_v10 = vld [vmem:[%s2346_s1 + $0x134] sm:$0xf] }
  0x4d   :  { %808 = vmatpush.bf16.msrb.mxu2 %v1394_v53  ;;  %v1565_v8 = vld [vmem:[%s2346_s1 + $0x2c4] sm:$0xf]  ;;  %v1375_v60 = vld [vmem:[%s2346_s1 + $0x2c8] sm:$0xf0]  ;;  %v1175_v11 = vld [vmem:[%s2346_s1 + $0x138] sm:$0xf0]  ;;  %v1250_v14 = vor.u32 %v1533_v4, %v1247_v7 }
  0x4e   :  { %796 = vmatpush.bf16.msra.mxu3 %v1322_v61  ;;  %v1547_v12 = vld [vmem:[%s2346_s1 + $0x234] sm:$0xf]  ;;  %v1303_v13 = vld [vmem:[%s2346_s1 + $0x238] sm:$0xf0]  ;;  %v1378_v15 = vor.u32 %v1565_v8, %v1375_v60  ;;  %v1178_v17 = vor.u32 %v1515_v10, %v1175_v11  ;;  %v1513_v22 = vld [vmem:[%s2346_s1 + $0x124] sm:$0xf] }
  0x4f   :  { %783 = vmatpush.bf16.msra.mxu1 %v1258_v2  ;;  %v1531_v16 = vld [vmem:[%s2346_s1 + $0x1b4] sm:$0xf]  ;;  %v1239_v18 = vld [vmem:[%s2346_s1 + $0x1b8] sm:$0xf0]  ;;  %v1306_v21 = vor.u32 %v1547_v12, %v1303_v13  ;;  %v1167_v23 = vld [vmem:[%s2346_s1 + $0x128] sm:$0xf0] }
  0x50   :  { %771 = vmatpush.bf16.msra.mxu0 %v1186_v6  ;;  %v1563_v19 = vld [vmem:[%s2346_s1 + $0x2b4] sm:$0xf]  ;;  %v1367_v20 = vld [vmem:[%s2346_s1 + $0x2b8] sm:$0xf0]  ;;  %v1545_v24 = vld [vmem:[%s2346_s1 + $0x224] sm:$0xf]  ;;  %v1242_v26 = vor.u32 %v1531_v16, %v1239_v18  ;;  %v1170_v29 = vor.u32 %v1513_v22, %v1167_v23 }
  0x51   :  { %809 = vmatpush.bf16.msrb.mxu2 %v1386_v3  ;;  %v1295_v25 = vld [vmem:[%s2346_s1 + $0x228] sm:$0xf0]  ;;  %v1370_v27 = vor.u32 %v1563_v19, %v1367_v20  ;;  %v1529_v28 = vld [vmem:[%s2346_s1 + $0x1a4] sm:$0xf]  ;;  %v1511_v35 = vld [vmem:[%s2346_s1 + $0x114] sm:$0xf] }
  0x52   :  { %797 = vmatpush.bf16.msra.mxu3 %v1314_v9  ;;  %v1231_v30 = vld [vmem:[%s2346_s1 + $0x1a8] sm:$0xf0]  ;;  %v1561_v31 = vld [vmem:[%s2346_s1 + $0x2a4] sm:$0xf]  ;;  %v1298_v33 = vor.u32 %v1545_v24, %v1295_v25  ;;  %v1159_v36 = vld [vmem:[%s2346_s1 + $0x118] sm:$0xf0] }
  0x53   :  { %784 = vmatpush.bf16.msra.mxu1 %v1250_v14  ;;  %v1359_v32 = vld [vmem:[%s2346_s1 + $0x2a8] sm:$0xf0]  ;;  %v1543_v37 = vld [vmem:[%s2346_s1 + $0x214] sm:$0xf]  ;;  %v1287_v38 = vld [vmem:[%s2346_s1 + $0x218] sm:$0xf0]  ;;  %v1234_v39 = vor.u32 %v1529_v28, %v1231_v30  ;;  %v1162_v43 = vor.u32 %v1511_v35, %v1159_v36 }
  0x54   :  { %772 = vmatpush.bf16.msra.mxu0 %v1178_v17  ;;  %v1362_v40 = vor.u32 %v1561_v31, %v1359_v32  ;;  %v1527_v42 = vld [vmem:[%s2346_s1 + $0x194] sm:$0xf]  ;;  %v1223_v44 = vld [vmem:[%s2346_s1 + $0x198] sm:$0xf0]  ;;  %v1290_v48 = vor.u32 %v1543_v37, %v1287_v38  ;;  %v1509_v49 = vld [vmem:[%s2346_s1 + $0x104] sm:$0xf] }
  0x55   :  { %810 = vmatpush.bf16.msrb.mxu2 %v1378_v15  ;;  %v1559_v45 = vld [vmem:[%s2346_s1 + $0x294] sm:$0xf]  ;;  %v1351_v47 = vld [vmem:[%s2346_s1 + $0x298] sm:$0xf0]  ;;  %v1151_v50 = vld [vmem:[%s2346_s1 + $0x108] sm:$0xf0]  ;;  %v1226_v56 = vor.u32 %v1527_v42, %v1223_v44 }
  0x56   :  { %798 = vmatpush.bf16.msra.mxu3 %v1306_v21  ;;  %v1541_v51 = vld [vmem:[%s2346_s1 + $0x204] sm:$0xf]  ;;  %v1279_v52 = vld [vmem:[%s2346_s1 + $0x208] sm:$0xf0]  ;;  %v1354_v57 = vor.u32 %v1559_v45, %v1351_v47  ;;  %v1154_v58 = vor.u32 %v1509_v49, %v1151_v50  ;;  %v1582_v4 = vld [vmem:[%s2348_s3 + $0x38] sm:$0xff]  ;;  %s1619_s15 = smov [#allocation2]  }
  0x57   :  { %785 = vmatpush.bf16.msra.mxu1 %v1242_v26  ;;  %v1573_v53 = vld [vmem:[%s2346_s1 + $0x304] sm:$0xf]  ;;  %v1407_v54 = vld [vmem:[%s2346_s1 + $0x308] sm:$0xf0]  ;;  %v1282_v62 = vor.u32 %v1541_v51, %v1279_v52  ;;  %v1581_v6 = vld [vmem:[%s2348_s3 + $0x30] sm:$0xff]  ;;  %s1008_s16 = sshll.u32 %s1619_s15, 4  ;;  %s1009_s16 = int_to_ptr.vmem [resolvable:$true] %s1008_s16 }
  0x58   :  { %773 = vmatpush.bf16.msra.mxu0 %v1170_v29  ;;  %v1525_v59 = vld [vmem:[%s2346_s1 + $0x184] sm:$0xf]  ;;  %v1215_v61 = vld [vmem:[%s2346_s1 + $0x188] sm:$0xf0]  ;;  %v1410_v1 = vor.u32 %v1573_v53, %v1407_v54  ;;  %v127_v10 = vld [vmem:[%s2347_s2] sm:$0x3] }
  0x59   :  { %811 = vmatpush.bf16.msrb.mxu2 %v1370_v27  ;;  %v1557_v63 = vld [vmem:[%s2346_s1 + $0x284] sm:$0xf]  ;;  %v1343_v0 = vld [vmem:[%s2346_s1 + $0x288] sm:$0xf0]  ;;  %v1218_v2 = vor.u32 %v1525_v59, %v1215_v61  ;;  %v1590_v13 = vld [vmem:[%s2348_s3 + $0x78] sm:$0xff]  ;;  %v129_v15 = vperm.slane %v127_v10, 0 }
  0x5a   :  { %799 = vmatpush.bf16.msra.mxu3 %v1298_v33  ;;  %v1346_v3 = vor.u32 %v1557_v63, %v1343_v0  ;;  %v1576_v7 = vld [vmem:[%s2348_s3 + $0x8] sm:$0xff]  ;;  %v1575_v9 = vld [vmem:[%s2348_s3] sm:$0xff]  ;;  %v1589_v17 = vld [vmem:[%s2348_s3 + $0x70] sm:$0xff]  ;;  %v130_v51 = vperm.slane %v127_v10, 1  ;;  %s1010_s19 = sshll.u32 %s2351_s6, 4  ;;  %s1011_s19 = int_to_ptr.hbm [resolvable:$true] %s1010_s19 }
  0x5b   :  { %786 = vmatpush.bf16.msra.mxu1 %v1234_v39  ;;  %v835_v23 = vld [vmem:[%s2350_s5] sm:$0xff]  ;;  %v1588_v24 = vld [vmem:[%s2348_s3 + $0x68] sm:$0xff]  ;;  %v1586_v36 = vld [vmem:[%s2348_s3 + $0x58] sm:$0xff] }
  0x5c   :  { %774 = vmatpush.bf16.msra.mxu0 %v1162_v43  ;;  %v836_v28 = vunpack.c.l.bf16 %v835_v23  ;;  %v1587_v31 = vld [vmem:[%s2348_s3 + $0x60] sm:$0xff]  ;;  %v1585_v44 = vld [vmem:[%s2348_s3 + $0x50] sm:$0xff]  ;;  %v1584_v47 = vld [vmem:[%s2348_s3 + $0x48] sm:$0xff] }
  0x5d   :  { %812 = vmatpush.bf16.msrb.mxu2 %v1362_v40  ;;  %v1583_v50 = vld [vmem:[%s2348_s3 + $0x40] sm:$0xff] }
  0x5e   :  { %800 = vmatpush.bf16.msra.mxu3 %v1290_v48  ;;  %v838_v35 = vmul.f32 1.25, %v836_v28 }
  0x5f   :  { %787 = vmatpush.bf16.msra.mxu1 %v1226_v56 }
  0x60   :  { %775 = vmatpush.bf16.msra.mxu0 %v1154_v58 }
  0x61   :  { %813 = vmatpush.bf16.msrb.mxu2 %v1354_v57 }
  0x62   :  { %801 = vmatpush.bf16.msra.mxu3 %v1282_v62 }
  0x63   :  { %788 = vmatpush.bf16.msra.mxu1 %v1218_v2  ;;  %776 = vmatmul.bf16.vlgmr.msra.gmra.mxu0 %v1895_v55  ;;  %v1580_v55 = vld [vmem:[%s2348_s3 + $0x28] sm:$0xff] }
  0x64   :  { %827 = vmatpush.bf16.msrb.mxu0 %v1410_v1  ;;  %v837_v1 = vunpack.c.h.bf16 %v835_v23 }
  0x65   :  { %802 = vmatmul.bf16.vlgmr.msra.gmra.mxu3 %v2103_v34  ;;  %814 = vmatpush.bf16.msrb.mxu2 %v1346_v3  ;;  %v1577_v34 = vld [vmem:[%s2348_s3 + $0x10] sm:$0xff] }
  0x66   :  { %789 = vmatmul.bf16.vlgmr.msra.gmra.mxu1 %v1923_v5  ;;  %v1579_v5 = vld [vmem:[%s2348_s3 + $0x20] sm:$0xff]  ;;  %989 = vmatpush.bf16.msrb.mxu3 %v1590_v13 }
  0x67   :  { %976 = vmatpush.bf16.msrb.mxu1 %v1582_v4 }
  0x68   :  { %815 = vmatmul.bf16.vlgmr.msrb.gmra.mxu2 %v2114_v41 }
  0x6a   :  { %990 = vmatpush.bf16.msrb.mxu3 %v1589_v17 }
  0x6b   :  { %977 = vmatpush.bf16.msrb.mxu1 %v1581_v6 }
  0x6e   :  { %991 = vmatpush.bf16.msrb.mxu3 %v1588_v24 }
  0x6f   :  { %978 = vmatpush.bf16.msrb.mxu1 %v1580_v55  ;;  %v839_v55 = vmul.f32 1.25, %v837_v1 }
  0x72   :  { %992 = vmatpush.bf16.msrb.mxu3 %v1587_v31 }
  0x73   :  { %1412 = vmatmul.msk.bf16.vlgmr.msrb.gmra.mxu0 %vm647_vm0, %v2006_v46  ;;  %979 = vmatpush.bf16.msrb.mxu1 %v1579_v5  ;;  %v1578_v46 = vld [vmem:[%s2348_s3 + $0x18] sm:$0xff] }
  0x76   :  { %993 = vmatpush.bf16.msrb.mxu3 %v1586_v36 }
  0x77   :  { %980 = vmatpush.bf16.msrb.mxu1 %v1578_v46 }
  0x7a   :  { %994 = vmatpush.bf16.msrb.mxu3 %v1585_v44 }
  0x7b   :  { %981 = vmatpush.bf16.msrb.mxu1 %v1577_v34 }
  0x7e   :  { %995 = vmatpush.bf16.msrb.mxu3 %v1584_v47 }
  0x7f   :  { %982 = vmatpush.bf16.msrb.mxu1 %v1576_v7 }
  0x82   :  { %996 = vmatpush.bf16.msrb.mxu3 %v1583_v50 }
  0x83   :  { %983 = vmatpush.bf16.msrb.mxu1 %v1575_v9  ;;  %v1592_v9 = vld [vmem:[%s2349_s4] ss:$0 sm:$0xff] }
  0xa0   :  { %v660_v41 = vpop.f32.mrf.mxu0 }
  0xa1   :  { %v661_v18 = vadd.f32 %v660_v41, %v129_v15 }
  0xa3   :  { %v673_v8 = vpop.f32.mrf.mxu1 }
  0xa4   :  { %v674_v20 = vadd.f32 %v673_v8, %v661_v18 }
  0xa7   :  { %v686_v60 = vpop.f32.mrf.mxu2 }
  0xa8   :  { %v699_v11 = vpop.f32.mrf.mxu3  ;;  %v662_v12 = vpop.f32.mrf.mxu0  ;;  %v687_v22 = vadd.f32 %v686_v60, %v674_v20 }
  0xaa   :  { %v700_v25 = vadd.f32 %v699_v11, %v687_v22 }
  0xab   :  { %v675_v14 = vpop.f32.mrf.mxu1 }
  0xaf   :  { %v688_v16 = vpop.f32.mrf.mxu2 }
  0xb0   :  { %v701_v19 = vpop.f32.mrf.mxu3 }
  0xb7   :  { %v738_v21 = vpop.f32.mrf.mxu2 }
  0xbf   :  { %v740_v29 = vpop.f32.mrf.mxu2 }
  0xc0   :  { %v712_v26 = vpop.f32.mrf.mxu0 }
  0xc1   :  { %v713_v27 = vadd.f32 %v712_v26, %v700_v25 }
  0xc3   :  { %v725_v30 = vpop.f32.mrf.mxu1 }
  0xc4   :  { %v726_v32 = vadd.f32 %v725_v30, %v713_v27 }
  0xc6   :  { %v739_v33 = vadd.f32 %v738_v21, %v726_v32 }
  0xc8   :  { %v833_v37 = vmax.f32 %v739_v33, 0.0  ;;  %v714_v38 = vpop.f32.mrf.mxu0 }
  0xca   :  { %v840_v39 = vmul.f32 %v838_v35, %v833_v37 }
  0xcb   :  { %v764_v40 = vpop.f32.mrf.mxu2  ;;  %v727_v43 = vpop.f32.mrf.mxu1 }
  0xcc   :  { %v842_v45 = vpack.c.bf16 %v840_v39, %v840_v39 }
  0xce   :  { %v751_v42 = vpop.f32.mrf.mxu3  ;;  %984 = vmatmul.bf16.vlgmr.msrb.gmra.mxu1 %v842_v45 }
  0xcf   :  { %v752_v52 = vadd.f32 %v751_v42, %v130_v51 }
  0xd1   :  { %v765_v54 = vadd.f32 %v764_v40, %v752_v52 }
  0xd3   :  { %v766_v48 = vpop.f32.mrf.mxu2 }
  0xd6   :  { %v753_v49 = vpop.f32.mrf.mxu3 }
  0xe0   :  { %v777_v53 = vpop.f32.mrf.mxu0 }
  0xe1   :  { %v778_v57 = vadd.f32 %v777_v53, %v765_v54 }
  0xe3   :  { %v790_v56 = vpop.f32.mrf.mxu1 }
  0xe4   :  { %v791_v61 = vadd.f32 %v790_v56, %v778_v57 }
  0xe8   :  { %v803_v58 = vpop.f32.mrf.mxu3  ;;  %v779_v59 = vpop.f32.mrf.mxu0 }
  0xe9   :  { %v804_v63 = vadd.f32 %v803_v58, %v791_v61 }
  0xeb   :  { %v816_v62 = vpop.f32.mrf.mxu2  ;;  %v792_v0 = vpop.f32.mrf.mxu1 }
  0xec   :  { %v817_v2 = vadd.f32 %v816_v62, %v804_v63 }
  0xf0   :  { %v805_v3 = vpop.f32.mrf.mxu3  ;;  %v829_v4 = vpop.f32.mrf.mxu0 }
  0xf1   :  { %v830_v6 = vadd.f32 %v829_v4, %v817_v2 }
  0xf3   :  { %v818_v5 = vpop.f32.mrf.mxu2  ;;  %v834_v46 = vmax.f32 %v830_v6, 0.0 }
  0xf5   :  { %v841_v34 = vmul.f32 %v839_v55, %v834_v46 }
  0xf7   :  { %v843_v41 = vpack.c.bf16 %v841_v34, %v841_v34 }
  0xf8   :  { %v831_v7 = vpop.f32.mrf.mxu0 }
  0xf9   :  { %997 = vmatmul.bf16.vlgmr.msrb.gmra.mxu3 %v843_v41 }
 0x14b   :  { %v985_v8 = vpop.f32.mrf.mxu1 }
 0x14c   :  { %v986_v10 = vadd.f32 %v1592_v9, %v985_v8 }
 0x153   :  { %v987_v60 = vpop.f32.mrf.mxu1 }
 0x17c   :  { %v998_v11 = vpop.f32.mrf.mxu3 }
 0x17d   :  { %v999_v12 = vadd.f32 %v998_v11, %v986_v10 }
 0x17f   :  { %1002 = vst [vmem:[#allocation2] sm:$0xff] %v999_v12 }
 0x180   :  { %1013 = dma.vmem_to_hbm [thread:$0]  %s1009_s16, 128, %s1011_s19, [#allocation3]  }
 0x184   :  { %v1000_v13 = vpop.f32.mrf.mxu3 }
 0x185   :  { %1617 = dma.done.wait [#allocation3], 128  }
 0x186   :  { %1618 = vsyncadd [#allocation3], 4294967168 }
 0x187   :  { %1018 = vsyncpa [#allocation3], 1 }

</bundles_post_ra>
